<compile_context>
chip_gen: v7x
topology: tpu7x:2x2x1
jax: 0.10.0
libtpu: 0.0.40
codegen_flags: <defaults>
</compile_context>

<pallas_src>
import math

import jax
import jax.numpy as jnp
from jax.experimental import pallas as pl
from jax.experimental.pallas import tpu as pltpu

HID = 20          # hidden width of the PyTorch module
F = 32            # row stride of the packed parameter slab (multiple of 8)
IN_PAD = 8        # padded input-feature sublanes   (requires n_obs    <= 8)
HID_PAD = 24      # padded hidden width used in-kernel (multiple of 8, >= HID)
OUT_PAD = 8       # padded output rows used in-kernel  (requires n_act <= 8)


def _elu(x):
    # ELU, alpha = 1.0 (PyTorch default). Clamp the exp argument so the
    # not-taken branch can never overflow to inf.
    return jnp.where(x > 0, x, jnp.exp(jnp.minimum(x, 0.0)) - 1.0)


def pgnn_kernel(x_ref, p_ref, o_ref):
    """x_ref: [IN_PAD, TILE_B]; p_ref: [3F, F+1] packed params; o_ref: [n_act, TILE_B]."""
    x = x_ref[...]                       # [8, TILE_B] (batch on lanes)
    n_act = o_ref.shape[0]

    # Static slices of the VMEM-resident parameter slab (only the live rows/cols).
    w1 = p_ref[0:HID_PAD, 0:IN_PAD]                 # [24, 8]
    b1 = p_ref[0:HID_PAD, F:F + 1]                  # [24, 1] -> broadcasts over lanes
    w2 = p_ref[F:F + HID_PAD, 0:HID_PAD]            # [24, 24]
    b2 = p_ref[F:F + HID_PAD, F:F + 1]              # [24, 1]
    w3 = p_ref[2 * F:2 * F + OUT_PAD, 0:HID_PAD]    # [8, 24]
    b3 = p_ref[2 * F:2 * F + OUT_PAD, F:F + 1]      # [8, 1]

    h = _elu(jnp.dot(w1, x, preferred_element_type=jnp.float32) + b1)   # [24, TILE_B]
    h = _elu(jnp.dot(w2, h, preferred_element_type=jnp.float32) + b2)   # [24, TILE_B]
    z = jnp.dot(w3, h, preferred_element_type=jnp.float32) + b3         # [8,  TILE_B]

    # Exact sigmoid: exp on the EUP, one VALU divide, on only 8 rows.
    sig = 1.0 / (1.0 + jnp.exp(-z))
    o_ref[...] = sig[:n_act, :]          # lane-dense store of the real action rows


def pack_params(w1, b1, w2, b2, w3, b3):
    """Pack PyTorch-layout weights ([out, in]) and biases into one (3F, F+1) slab.

    Layer l occupies rows [l*F, l*F + out_l): weights in cols [0, in_l),
    bias in column F. Everything else is zero, so the padded contractions
    (K = IN_PAD / HID_PAD) are exact and padded hidden rows stay exactly 0
    through ELU (elu(0) = 0).
    """
    n_obs = w1.shape[1]
    n_act = w3.shape[0]
    assert n_obs <= IN_PAD and n_act <= OUT_PAD and HID <= HID_PAD
    slab = jnp.zeros((3 * F, F + 1), jnp.float32)
    slab = slab.at[0:HID, 0:n_obs].set(w1.astype(jnp.float32))
    slab = slab.at[0:HID, F].set(b1.astype(jnp.float32))
    slab = slab.at[F:F + HID, 0:HID].set(w2.astype(jnp.float32))
    slab = slab.at[F:F + HID, F].set(b2.astype(jnp.float32))
    slab = slab.at[2 * F:2 * F + n_act, 0:HID].set(w3.astype(jnp.float32))
    slab = slab.at[2 * F:2 * F + n_act, F].set(b3.astype(jnp.float32))
    return slab


def pgnn_forward(x, slab, n_actions, *, tile_b=4096):
    """x: [B, n_obs] float32; slab: packed params from pack_params(). Returns [B, n_actions]."""
    B, n_obs = x.shape
    assert n_obs <= IN_PAD and n_actions <= OUT_PAD

    # Batch tiling: large tiles to amortize per-step overhead, but keep >= 2
    # grid steps for moderate batches so v7x's two TensorCores both get work.
    tile_cap = max(128, min((tile_b // 128) * 128, 32768))
    b_128 = pl.cdiv(B, 128) * 128
    if b_128 <= tile_cap:
        n_tiles = 2 if b_128 >= 256 else 1
        tile = pl.cdiv(b_128 // 128, n_tiles) * 128
    else:
        tile = tile_cap
    b_pad = pl.cdiv(B, tile) * tile
    grid = (b_pad // tile,)

    # Transpose + zero-pad ONCE in the wrapper (feature axis padded only to 8
    # sublanes) so the batch maps to lanes in-kernel.  For best end-to-end
    # performance call pgnn_forward under the caller's jit so XLA fuses this pad.
    xt = jnp.zeros((IN_PAD, b_pad), jnp.float32).at[:n_obs, :B].set(
        x.T.astype(jnp.float32))

    out_t = pl.pallas_call(
        pgnn_kernel,
        out_shape=jax.ShapeDtypeStruct((n_actions, b_pad), jnp.float32),
        grid=grid,
        in_specs=[
            # Batch tile of the (already transposed) input: new block each step.
            pl.BlockSpec((IN_PAD, tile), lambda i: (0, i)),
            # Parameter slab: constant block index -> DMA'd once, stays resident.
            pl.BlockSpec(slab.shape, lambda i: (0, 0)),
        ],
        out_specs=pl.BlockSpec((n_actions, tile), lambda i: (0, i)),
        compiler_params=pltpu.CompilerParams(
            dimension_semantics=("parallel",)),
    )(xt, slab)

    # Back to the PyTorch [batch, n_actions] convention; drop batch padding.
    return out_t[:, :B].T


def init_params(key, n_observations, n_actions, hidden=HID):
    """PyTorch-style uniform(-1/sqrt(fan_in), 1/sqrt(fan_in)) init, [out, in] layout."""
    def linear(key, fan_in, fan_out):
        kw, kb = jax.random.split(key)
        bound = 1.0 / math.sqrt(fan_in)
        w = jax.random.uniform(kw, (fan_out, fan_in), jnp.float32, -bound, bound)
        b = jax.random.uniform(kb, (fan_out,), jnp.float32, -bound, bound)
        return w, b

    k1, k2, k3 = jax.random.split(key, 3)
    w1, b1 = linear(k1, n_observations, hidden)
    w2, b2 = linear(k2, hidden, hidden)
    w3, b3 = linear(k3, hidden, n_actions)
    return (w1, b1, w2, b2, w3, b3)


def pgnn_reference(x, w1, b1, w2, b2, w3, b3):
    """Pure-JAX reference mirroring the PyTorch forward (x @ W.T + b)."""
    h = jax.nn.elu(x @ w1.T + b1)
    h = jax.nn.elu(h @ w2.T + b2)
    return jax.nn.sigmoid(h @ w3.T + b3)


if __name__ == "__main__":
    n_observations = 4
    n_actions = 2

    key = jax.random.PRNGKey(0)
    kx, kx2, kp = jax.random.split(key, 3)
    params = init_params(kp, n_observations, n_actions)
    slab = pack_params(*params)

    # Case 1: moderate batch -> 2 grid steps (pipelining + v7x megacore path).
    x_big = jax.random.normal(kx, (256, n_observations), dtype=jnp.float32)
    out_big = jax.block_until_ready(pgnn_forward(x_big, slab, n_actions))
    ref_big = pgnn_reference(x_big, *params)
    assert out_big.shape == (256, n_actions)
    assert jnp.allclose(out_big, ref_big, atol=1e-5, rtol=1e-5)

    # Case 2: tiny odd batch (batch=2, padded internally to one 128-wide tile).
    x_small = jax.random.normal(kx2, (2, n_observations), dtype=jnp.float32)
    out_small = jax.block_until_ready(pgnn_forward(x_small, slab, n_actions))
    ref_small = pgnn_reference(x_small, *params)
    assert out_small.shape == (2, n_actions)
    assert jnp.allclose(out_small, ref_small, atol=1e-5, rtol=1e-5)

    print("KERNEL_OK")
</pallas_src>

<mosaic_0001>
module attributes {stable_mosaic.version = 11 : i64} {
  func.func @pgnn_kernel(%arg0: i32, %arg1: memref<8x128xf32, #tpu.memory_space<vmem>>, %arg2: memref<96x33xf32, #tpu.memory_space<vmem>>, %arg3: memref<2x128xf32, #tpu.memory_space<vmem>>) attributes {dimension_semantics = [#tpu.dimension_semantics<parallel>], iteration_bounds = array<i64: 2>, scalar_prefetch = 0 : i64, scratch_operands = 0 : i64, tpu.core_type = #tpu.core_type<tc>, window_params = [{transform_indices = @transform_0, window_bounds = array<i64: 8, 128>}, {pipeline_mode = #tpu.pipeline_mode<synchronous>, transform_indices = @transform_1, window_bounds = array<i64: 96, 33>}, {transform_indices = @transform_2, window_bounds = array<i64: 2, 128>}]} {
    %c0 = arith.constant 0 : index
    %c0_0 = arith.constant 0 : index
    %0 = vector.load %arg1[%c0, %c0_0] : memref<8x128xf32, #tpu.memory_space<vmem>>, vector<8x128xf32>
    %c0_1 = arith.constant 0 : index
    %c0_2 = arith.constant 0 : index
    %1 = vector.load %arg2[%c0_1, %c0_2] : memref<96x33xf32, #tpu.memory_space<vmem>>, vector<24x8xf32>
    %c0_3 = arith.constant 0 : index
    %c32 = arith.constant 32 : index
    %2 = vector.load %arg2[%c0_3, %c32] : memref<96x33xf32, #tpu.memory_space<vmem>>, vector<24x1xf32>
    %c32_4 = arith.constant 32 : index
    %c0_5 = arith.constant 0 : index
    %3 = vector.load %arg2[%c32_4, %c0_5] : memref<96x33xf32, #tpu.memory_space<vmem>>, vector<24x24xf32>
    %c32_6 = arith.constant 32 : index
    %c32_7 = arith.constant 32 : index
    %4 = vector.load %arg2[%c32_6, %c32_7] : memref<96x33xf32, #tpu.memory_space<vmem>>, vector<24x1xf32>
    %c64 = arith.constant 64 : index
    %c0_8 = arith.constant 0 : index
    %5 = vector.load %arg2[%c64, %c0_8] : memref<96x33xf32, #tpu.memory_space<vmem>>, vector<8x24xf32>
    %c64_9 = arith.constant 64 : index
    %c32_10 = arith.constant 32 : index
    %6 = vector.load %arg2[%c64_9, %c32_10] : memref<96x33xf32, #tpu.memory_space<vmem>>, vector<8x1xf32>
    %cst = arith.constant dense<0.000000e+00> : vector<24x128xf32>
    %7 = tpu.matmul %1, %0, %cst {dimension_numbers = #tpu.dot_dimension_numbers<[1], [0], [0], [1], [0, 0, 1, 1], [], []>} : vector<24x8xf32>, vector<8x128xf32>, vector<24x128xf32> -> vector<24x128xf32>
    %8 = vector.broadcast %2 : vector<24x1xf32> to vector<24x128xf32>
    %9 = arith.addf %7, %8 : vector<24x128xf32>
    %cst_11 = arith.constant 0.000000e+00 : f32
    %10 = vector.broadcast %cst_11 : f32 to vector<24x128xf32>
    %11 = arith.cmpf ogt, %9, %10 : vector<24x128xf32>
    %cst_12 = arith.constant 0.000000e+00 : f32
    %12 = vector.broadcast %cst_12 : f32 to vector<24x128xf32>
    %13 = arith.minimumf %9, %12 : vector<24x128xf32>
    %14 = math.exp %13 : vector<24x128xf32>
    %cst_13 = arith.constant 1.000000e+00 : f32
    %15 = vector.broadcast %cst_13 : f32 to vector<24x128xf32>
    %16 = arith.subf %14, %15 : vector<24x128xf32>
    %17 = arith.select %11, %9, %16 : vector<24x128xi1>, vector<24x128xf32>
    %cst_14 = arith.constant dense<0.000000e+00> : vector<24x128xf32>
    %18 = tpu.matmul %3, %17, %cst_14 {dimension_numbers = #tpu.dot_dimension_numbers<[1], [0], [0], [1], [0, 0, 1, 1], [], []>} : vector<24x24xf32>, vector<24x128xf32>, vector<24x128xf32> -> vector<24x128xf32>
    %19 = vector.broadcast %4 : vector<24x1xf32> to vector<24x128xf32>
    %20 = arith.addf %18, %19 : vector<24x128xf32>
    %cst_15 = arith.constant 0.000000e+00 : f32
    %21 = vector.broadcast %cst_15 : f32 to vector<24x128xf32>
    %22 = arith.cmpf ogt, %20, %21 : vector<24x128xf32>
    %cst_16 = arith.constant 0.000000e+00 : f32
    %23 = vector.broadcast %cst_16 : f32 to vector<24x128xf32>
    %24 = arith.minimumf %20, %23 : vector<24x128xf32>
    %25 = math.exp %24 : vector<24x128xf32>
    %cst_17 = arith.constant 1.000000e+00 : f32
    %26 = vector.broadcast %cst_17 : f32 to vector<24x128xf32>
    %27 = arith.subf %25, %26 : vector<24x128xf32>
    %28 = arith.select %22, %20, %27 : vector<24x128xi1>, vector<24x128xf32>
    %cst_18 = arith.constant dense<0.000000e+00> : vector<8x128xf32>
    %29 = tpu.matmul %5, %28, %cst_18 {dimension_numbers = #tpu.dot_dimension_numbers<[1], [0], [0], [1], [0, 0, 1, 1], [], []>} : vector<8x24xf32>, vector<24x128xf32>, vector<8x128xf32> -> vector<8x128xf32>
    %30 = vector.broadcast %6 : vector<8x1xf32> to vector<8x128xf32>
    %31 = arith.addf %29, %30 : vector<8x128xf32>
    %cst_19 = arith.constant 0.000000e+00 : f32
    %32 = vector.broadcast %cst_19 : f32 to vector<8x128xf32>
    %33 = arith.subf %32, %31 : vector<8x128xf32>
    %34 = math.exp %33 : vector<8x128xf32>
    %cst_20 = arith.constant 1.000000e+00 : f32
    %35 = vector.broadcast %cst_20 : f32 to vector<8x128xf32>
    %36 = arith.addf %35, %34 : vector<8x128xf32>
    %cst_21 = arith.constant 1.000000e+00 : f32
    %37 = vector.broadcast %cst_21 : f32 to vector<8x128xf32>
    %38 = arith.divf %37, %36 : vector<8x128xf32>
    %39 = vector.extract_strided_slice %38 {offsets = [0, 0], sizes = [2, 128], strides = [1, 1]} : vector<8x128xf32> to vector<2x128xf32>
    %c0_22 = arith.constant 0 : index
    %c0_23 = arith.constant 0 : index
    %40 = vector.load %arg3[%c0_22, %c0_23] : memref<2x128xf32, #tpu.memory_space<vmem>>, vector<2x128xf32>
    tpu.vector_store %arg3[%c0_22, %c0_23], %39 {strides = array<i32>} : memref<2x128xf32, #tpu.memory_space<vmem>>, vector<2x128xf32>,
    return
  }
  func.func @transform_0(%arg0: i32) -> (i32, i32) {
    %c0_i32 = arith.constant 0 : i32
    %c0_i32_0 = arith.constant 0 : i32
    return %c0_i32, %arg0 : i32, i32
  }
  func.func @transform_1(%arg0: i32) -> (i32, i32) {
    %c0_i32 = arith.constant 0 : i32
    %c0_i32_0 = arith.constant 0 : i32
    %c0_i32_1 = arith.constant 0 : i32
    return %c0_i32, %c0_i32_0 : i32, i32
  }
  func.func @transform_2(%arg0: i32) -> (i32, i32) {
    %c0_i32 = arith.constant 0 : i32
    %c0_i32_0 = arith.constant 0 : i32
    return %c0_i32, %arg0 : i32, i32
  }
}

</mosaic_0001>

<bundles_post_ra>
// kernel: tpu_custom_call.1
= control target key start
LH: loop header
LB: loop body
LE: loop exit
PB: predicated region body
PF: predicated region fallthrough
CT: control target
= control target key end

     0   :  { %7 = vsyncpa [#allocation3], 0  ;;  %s916_s0 = inlined_call_operand.vmem [shape: f32[8,256], index: 0, kind: input, shape index: {}]   ;;  %s917_s1 = inlined_call_operand.vmem [shape: f32[96,33], index: 1, kind: input, shape index: {}]   ;;  %s918_s2 = inlined_call_operand.hbm [shape: f32[2,256], index: 2, kind: output, shape index: {}]  }
   0x1   :  { %9 = vsyncpa [#allocation3 + $0x1], 0  ;;  %s767_s9 = smov 0   ;;  %s769_s10 = smov 0  }
   0x2   :  { %s771_s11 = smov 0   ;;  %s773_s12 = smov 0  }
   0x3 LB: > { %s788_s13 = sadd.s32 4294967295, %s745_s12   ;;  %s544_s14 = sadd.s32 4294967294, %s745_s12   ;;  %s745_s12 = sphi %s773_s12, %s924_s12   ;;  %s741_s11 = sphi %s771_s11, %s923_s11   ;;  %s737_s10 = sphi %s769_s10, %s922_s10   ;;  %s733_s9 = sphi %s767_s9, %s921_s9  }
   0x4   : > { %s792_s15 = sadd.s32 1, %s745_s12   ;;  %s69_s16 = sadd.s32 1, %s741_s11 }
   0x5   : > { %s66_s17 = ssub.s32 %s745_s12, %s792_s15  ;;  %p79_p0 = scmp.ne.s32.totalorder %s741_s11, %s737_s10 }
   0x6   : > { %p67_p1 = scmp.eq.s32.totalorder %s66_s17, 0  ;;  %p80_p2 = scmp.eq.s32.totalorder %s788_s13, 1 }
   0x7   : > { %p85_p3 = scmp.ne.s32.totalorder %s737_s10, %s733_s9  ;;  %p86_p4 = scmp.eq.s32.totalorder %s544_s14, 1 }
   0x8   : > { %s803_s18 = scalar_select %p67_p1, %s741_s11, %s69_s16  }
   0x9   : > { %p805_p5 = por %p80_p2, %p79_p0  ;;  %p809_p6 = por %p86_p4, %p85_p3 }
   0xa   : > { %p547_p7 = scmp.ge.s32.totalorder %s745_s12, 1  ;;  %p114_p8 = scmp.lt.s32.totalorder %s745_s12, 3 }
   0xc   : > { %p115_p9 = pnand %p547_p7, %p114_p8 }
   0xd   : > { %p135_p10 = scmp.lt.s32.totalorder (!%p115_p9), %s788_s13, 1  ;;  %v747_v0 = vmov (!%p115_p9), 0.0   ;;  %vm748_vm0 = vmmov (!%p115_p9), 0   ;;  %v140_v1 = vld [vmem:[%s917_s1] sm:$0xff] (!%p115_p9)  ;;  %v142_v2 = vld [vmem:[%s917_s1 + $0x10] sm:$0xff] (!%p115_p9)  ;;  %v749_v3 = vmov (!%p115_p9), 32  }
   0xe   : > { %118 = sbr.rel (%p115_p9) target bundleno = 769 (0x301), region = 28  ;;  %581 = vmatprep.subr.mxu0 (!%p115_p9), %v747_v0  ;;  %583 = vmatprep.mubr.msk.f32.mxu0 (!%p115_p9), %vm748_vm0, %v747_v0  ;;  %vm162_vm1 = vcmask (!%p115_p9), 64512   ;;  %v143_v4 = vld [vmem:[%s917_s1 + $0x20] sm:$0xff] (!%p115_p9)  ;;  %v141_v6 = vld [vmem:[%s917_s1 + $0x8] sm:$0xff] (!%p115_p9)  ;;  %v145_v8 = vld [vmem:[%s917_s1 + $0x30] sm:$0xff] (!%p115_p9)  ;;  %v750_v10 = vmov (!%p115_p9), 0.0|0.0  }
   0xf   : > { %665 = vset.pattern.permute.xlu0 (!%p115_p9), %v749_v3  ;;  %666 = vset.pattern.permute.xlu1 (!%p115_p9), %v749_v3  ;;  %v144_v7 = vld [vmem:[%s917_s1 + $0x28] sm:$0xff] (!%p115_p9)  ;;  %v850_v9 = vld [vmem:[%s917_s1 + $0x40] sm:$0xff] (!%p115_p9)  ;;  %vm282_vm5 = vcmask (!%p115_p9), 195584   ;;  %s564_s23 = sshll.u32 (!%p115_p9), %s788_s13, 5 }
  0x10   : > { %149 = vperm.xlu0 (!%p115_p9), %665, %v140_v1   ;;  %159 = vperm.xlu1 (!%p115_p9), %666, %v142_v2   ;;  %s874_s28 = scalar_lea.hbm (!%p115_p9), %s918_s2, %s564_s23 }
  0x11   : > { %598 = vmatprep.mubr.msk.f32.mxu1 (!%p115_p9), %vm748_vm0, %v747_v0  ;;  %616 = vmatprep.subr.bf16.mxu1 (!%p115_p9), %v750_v10 }
  0x14   : > { %154 = vperm.xlu0 (!%p115_p9), %665, %v141_v6   ;;  %269 = vperm.xlu1 (!%p115_p9), %666, %v143_v4  }
  0x15   : > { %s136_s21 = scalar_select %p135_p10, %s788_s13, 1 }
  0x16   : > { %s751_s13 = smov [#allocation2]  }
  0x17   : > { %s549_s26 = sshll.u32 %s136_s21, 3  ;;  %s132_s21 = sand.u32 1, %s737_s10  }
  0x18   : > { %s138_s29 = scalar_lea.vmem %s916_s0, %s549_s26  ;;  %274 = vperm.xlu0 %665, %v144_v7   ;;  %279 = vperm.xlu1 %666, %v145_v8   ;;  %s548_s22 = sshll.u32 %s132_s21, 1 }
  0x19   : > { %v139_v5 = vld [vmem:[%s138_s29] sm:$0xff]  ;;  %s134_s24 = scalar_lea.vmem [#allocation2], %s548_s22  ;;  %s472_s29 = scalar_lea.sflag [#allocation3], %s132_s21 }
  0x1a   : > { %582 = vmatpush3.msra.mxu0 %v139_v5  ;;  %s485_s25 = sshll.u32 %s134_s24, 4  ;;  %s687_s3 = sshll.u32 %s751_s13, 4  ;;  %s876_s25 = int_to_ptr.vmem [resolvable:$true] %s485_s25  ;;  %s688_s3 = int_to_ptr.vmem [resolvable:$false] %s687_s3 }
  0x1b   : > { %584 = vmatmul.mubr.msk.f32.vlgmr.msra.gmra.mrb[0].mxu0 %vm162_vm1, %v140_v1  ;;  %619 = vmatprep.subr.bf16.mxu0 %v750_v10  ;;  %s683_s30 = scalar_lea.vmem %s876_s25, 32  ;;  %s689_s4 = scalar_lea.vmem %s688_s3, 64 }
  0x1c   : > { %586 = vmatprep.mubr.msk.f32.mxu0 %vm748_vm0, %v747_v0  ;;  %389 = vperm.xlu0 %665, %v850_v9   ;;  %p684_p11 = scmp.ne.s32.totalorder %s876_s25, %s683_s30  ;;  %p690_p0 = scmp.lt.s32.totalorder %s876_s25, %s688_s3 }
  0x1d   : > { %p691_p1 = scmp.lt.s32.totalorder %s689_s4, %s683_s30 }
  0x1e   : > { %p685_p12 = pnand %p684_p11, %p805_p5 }
  0x1f   : > { %587 = vmatmul.mubr.msk.f32.gmra.mrb[2].mxu0 %vm162_vm1, %v141_v6  ;;  %p692_p2 = por %p691_p1, %p690_p0 }
  0x20   : > { %589 = vmatprep.mubr.msk.f32.mxu0 %vm748_vm0, %v747_v0  ;;  %p686_p13 = pneg %p685_p12 }
  0x22   : > { %p693_p3 = pnand %p692_p2, %p686_p13 }
  0x23   : > { %590 = vmatmul.mubr.msk.f32.gmra.mrb[4].mxu0 %vm162_vm1, %v142_v2 }
  0x24   : > { %613 = vmatprep.mubr.msk.f32.mxu0 %vm748_vm0, %v747_v0 }
  0x8f   : > { %v150_v11 = vpop.permute.xlu0 %149  ;;  %v160_v22 = vpop.permute.xlu1 %159 }
  0x93   : > { %v155_v16 = vpop.permute.xlu0 %154  ;;  %v270_v39 = vpop.permute.xlu1 %269 }
  0x97   : > { %v275_v44 = vpop.permute.xlu0 %274  ;;  %v280_v50 = vpop.permute.xlu1 %279 }
  0xee   : > { %v235_v12 = vpop.f32.mrb[0].mxu0 }
  0xef   : > { %v236_v13 = vadd.f32 %v235_v12, %v150_v11  ;;  %v585_v14 = vpop.f32.mrb[1].mxu0 }
  0xf1   : > { %v252_v15 = vmin.f32 %v236_v13, 0.0  ;;  %vm249_vm2 = vcmp.gt.f32.partialorder %v236_v13, 0.0 }
  0xf2   : > { %v240_v17 = vpop.f32.mrb[2].mxu0 }
  0xf3   : > { %v255_v18 = vmul.f32 1.442695, %v252_v15  ;;  %v241_v19 = vadd.f32 %v240_v17, %v155_v16  ;;  %v588_v20 = vpop.f32.mrb[3].mxu0 }
  0xf5   : > { %667 = vpow2.f32 %v255_v18  ;;  %v253_v21 = vmin.f32 %v241_v19, 0.0  ;;  %vm250_vm3 = vcmp.gt.f32.partialorder %v241_v19, 0.0 }
  0xf6   : > { %v245_v23 = vpop.f32.mrb[4].mxu0 }
  0xf7   : > { %v257_v24 = vmul.f32 1.442695, %v253_v21  ;;  %v246_v25 = vadd.f32 %v245_v23, %v160_v22  ;;  %v591_v26 = vpop.f32.mrb[5].mxu0 }
  0xf9   : > { %669 = vpow2.f32 %v257_v24  ;;  %v254_v27 = vmin.f32 %v246_v25, 0.0  ;;  %vm251_vm4 = vcmp.gt.f32.partialorder %v246_v25, 0.0 }
  0xfb   : > { %v259_v28 = vmul.f32 1.442695, %v254_v27 }
  0xfd   : > { %671 = vpow2.f32 %v259_v28 }
  0xff   : > { %v668_v29 = vpop.eup %667 }
 0x100   : > { %v553_v30 = vadd.f32 -1.0, %v668_v29 }
 0x102   : > { %v264_v33 = vsel %vm249_vm2, %v236_v13, %v553_v30 }
 0x103   : > { %v670_v31 = vpop.eup %669 }
 0x104   : > { %v554_v32 = vadd.f32 -1.0, %v670_v31 }
 0x106   : > { %v265_v34 = vsel %vm250_vm3, %v241_v19, %v554_v32 }
 0x107   : > { %v672_v35 = vpop.eup %671  ;;  %v617_v36 = vpack.c.bf16 %v265_v34, %v264_v33 }
 0x108   : > { %v555_v37 = vadd.f32 -1.0, %v672_v35 }
 0x109   : > { %618 = vmatpush3.bf16.msra.mxu1 %v617_v36 }
 0x10a   : > { %596 = vmatprep.subr.mxu1 %v747_v0  ;;  %v266_v38 = vsel %vm251_vm4, %v246_v25, %v555_v37 }
 0x10d   : > { %597 = vmatpush3.msra.mxu1 %v266_v38 }
 0x10e   : > { %599 = vmatmul.mubr.msk.f32.vlgmr.msra.gmra.mrb[0].mxu1 %vm282_vm5, %v143_v4  ;;  %v390_v4 = vpop.permute.xlu0 %389 }
 0x10f   : > { %601 = vmatprep.mubr.msk.f32.mxu1 %vm748_vm0, %v747_v0 }
 0x112   : > { %602 = vmatmul.mubr.msk.f32.gmra.mrb[2].mxu1 %vm282_vm5, %v144_v7 }
 0x113   : > { %604 = vmatprep.mubr.msk.f32.mxu1 %vm748_vm0, %v747_v0 }
 0x116   : > { %605 = vmatmul.mubr.msk.f32.gmra.mrb[4].mxu1 %vm282_vm5, %v145_v8 }
 0x1e1   : > { %v355_v40 = vpop.f32.mrb[0].mxu1 }
 0x1e2   : > { %v356_v41 = vadd.f32 %v355_v40, %v270_v39  ;;  %v600_v42 = vpop.f32.mrb[1].mxu1 }
 0x1e4   : > { %v372_v43 = vmin.f32 %v356_v41, 0.0  ;;  %vm369_vm6 = vcmp.gt.f32.partialorder %v356_v41, 0.0 }
 0x1e5   : > { %v360_v45 = vpop.f32.mrb[2].mxu1 }
 0x1e6   : > { %v375_v46 = vmul.f32 1.442695, %v372_v43  ;;  %v361_v47 = vadd.f32 %v360_v45, %v275_v44  ;;  %v603_v48 = vpop.f32.mrb[3].mxu1 }
 0x1e8   : > { %673 = vpow2.f32 %v375_v46  ;;  %v373_v49 = vmin.f32 %v361_v47, 0.0  ;;  %vm370_vm7 = vcmp.gt.f32.partialorder %v361_v47, 0.0 }
 0x1e9   : > { %v365_v51 = vpop.f32.mrb[4].mxu1 }
 0x1ea   : > { %v377_v52 = vmul.f32 1.442695, %v373_v49  ;;  %v366_v53 = vadd.f32 %v365_v51, %v280_v50  ;;  %v606_v54 = vpop.f32.mrb[5].mxu1 }
 0x1ec   : > { %675 = vpow2.f32 %v377_v52  ;;  %v374_v55 = vmin.f32 %v366_v53, 0.0  ;;  %vm371_vm8 = vcmp.gt.f32.partialorder %v366_v53, 0.0 }
 0x1ee   : > { %v379_v56 = vmul.f32 1.442695, %v374_v55 }
 0x1f0   : > { %677 = vpow2.f32 %v379_v56 }
 0x1f2   : > { %v674_v57 = vpop.eup %673 }
 0x1f3   : > { %v559_v58 = vadd.f32 -1.0, %v674_v57 }
 0x1f5   : > { %v384_v61 = vsel %vm369_vm6, %v356_v41, %v559_v58 }
 0x1f6   : > { %v676_v59 = vpop.eup %675 }
 0x1f7   : > { %v560_v60 = vadd.f32 -1.0, %v676_v59 }
 0x1f9   : > { %v385_v62 = vsel %vm370_vm7, %v361_v47, %v560_v60 }
 0x1fa   : > { %v678_v63 = vpop.eup %677  ;;  %v620_v1 = vpack.c.bf16 %v385_v62, %v384_v61 }
 0x1fb   : > { %v561_v2 = vadd.f32 -1.0, %v678_v63 }
 0x1fc   : > { %621 = vmatpush3.bf16.msra.mxu0 %v620_v1 }
 0x1fd   : > { %611 = vmatprep.subr.mxu0 %v747_v0  ;;  %v386_v3 = vsel %vm371_vm8, %v366_v53, %v561_v2 }
 0x200   : > { %612 = vmatpush3.msra.mxu0 %v386_v3 }
 0x201   : > { %614 = vmatmul.mubr.msk.f32.vlgmr.msra.gmra.mrb[6].mxu0 %vm282_vm5, %v850_v9 }
 0x2d4   : > { %v460_v5 = vpop.f32.mrb[6].mxu0 }
 0x2d5   : > { %v461_v6 = vadd.f32 %v460_v5, %v390_v4  ;;  %v615_v7 = vpop.f32.mrb[7].mxu0 }
 0x2d7   : > { %v464_v8 = vsub.f32 0.0, %v461_v6 }
 0x2d9   : > { %v465_v10 = vmul.f32 1.442695, %v464_v8 }
 0x2db   : > { %679 = vpow2.f32 %v465_v10 }
 0x2e5   : > { %v680_v11 = vpop.eup %679 }
 0x2e6   : > { %v467_v12 = vadd.f32 1.0, %v680_v11 }
 0x2e8   : > { %681 = vrcp.f32 %v467_v12 }
 0x2f2   : > { %v682_v0 = vpop.eup %681 }
 0x2f3   : > { %470 = vst [vmem:[%s134_s24] sm:$0x3] %v682_v0 }
 0x2f4   : > { %696 = shalt.err (!%p693_p3)
}
 0x2f5   : > { %s697_s5 = scalar_lea.hbm %s874_s28, 32  ;;  %s701_s8 = scalar_lea.hbm %s918_s2, 64 }
 0x2f6   : > { %p698_p4 = scmp.ne.s32.totalorder %s874_s28, %s697_s5  ;;  %p702_p9 = scmp.lt.u32.totalorder %s874_s28, %s918_s2 }
 0x2f7   : > { %p703_p10 = scmp.lt.u32.totalorder %s701_s8, %s697_s5  ;;  %p705_p12 = scmp.lt.u32.totalorder %s697_s5, %s874_s28 }
 0x2f8   : > { %p699_p7 = pnand %p698_p4, %p805_p5 }
 0x2f9   : > { %p704_p11 = por %p703_p10, %p702_p9 }
 0x2fa   : > { %p700_p8 = pneg %p699_p7 }
 0x2fb   : > { %p706_p13 = por %p705_p12, %p704_p11 }
 0x2fd   : > { %p707_p0 = pnand %p706_p13, %p700_p8 }
 0x2ff   : > { %710 = shalt.err (!%p707_p0)
}
 0x300   : > { %622 = dma.vmem_to_hbm [thread:$0]  (%p805_p5), %s876_s25, 32, %s874_s28, %s472_s29  }
 0x301 PF: > { %p628_p1 = scmp.ge.s32.totalorder %s745_s12, 2  ;;  %s497_s17 = sand.u32 1, %s733_s9  }
 0x302   : > { %s498_s21 = scalar_lea.sflag [#allocation3], %s497_s17 }
 0x303   : > { %p625_p2 = pnand %p628_p1, %p809_p6 }
 0x305   : > { %728 = dma.done.wait (!%p625_p2), %s498_s21, 32  }
 0x306   : > { %730 = vsyncadd (!%p625_p2), %s498_s21, 4294967264  ;;  %p12_p3 = scmp.ge.s32.totalorder %s792_s15, 4   ;;  %s921_s9 = smov %s737_s10 }
 0x307   : > { %s922_s10 = smov %s741_s11  ;;  %s923_s11 = smov %s803_s18 }
 0x308   : > { %s924_s12 = smov %s792_s15  ;;  %14 = sbr.rel (!%p12_p3) target bundleno = 3 (0x3), region = 63 }
 0x30f   :  { %503 = vsyncpa [#allocation3], 1 }
 0x310   :  { %505 = vsyncpa [#allocation3 + $0x1], 1 }

</bundles_post_ra>
